<compile_context>
chip_gen: v5e
topology: v5e:2x2
jax: 0.10.0
libtpu: 0.0.40
codegen_flags: <defaults>
</compile_context>

<pallas_src>
import math
import jax
import jax.numpy as jnp
from jax.experimental import pallas as pl
from jax.experimental.pallas import tpu as pltpu


LANE = 128


def _round_up(v, m):
    return ((v + m - 1) // m) * m


# ---------------------------------------------------------------------------
# Pallas kernels
# ---------------------------------------------------------------------------

def _cos_sim_kernel(x_ref, s_ref):
    """abs pairwise cosine similarity: s[i, j] = |cos(x[i], x[j])|.

    torch.F.cosine_similarity clamps the norm product at eps=1e-8; we clamp
    each squared row norm at eps^2 before rsqrt, identical for any
    non-degenerate input.  The gram matrix is a single MXU dot_general
    contracting the feature dim of both operands (no explicit transpose).
    """
    x = x_ref[...]
    n2 = jnp.sum(x * x, axis=-1, keepdims=True)                    # (N, 1)
    inv = jax.lax.rsqrt(jnp.maximum(n2, jnp.float32(1e-16)))
    xn = x * inv
    g = jax.lax.dot_general(xn, xn,
                            dimension_numbers=(((1,), (1,)), ((), ())),
                            preferred_element_type=jnp.float32)
    s_ref[...] = jnp.abs(g)


def _make_fused_gnn_kernel(block_meta):
    """One fused kernel for everything downstream of the quantile:

        adj    = (sim >= eps)                       (eps from SMEM scalar)
        A_norm = adj / max(row_deg, 1)              (== PyG mean aggregation,
                                                     adj symmetric -> no adj_t)
        h      = relu(x @ Wi + bi)                  (GNN input Linear)
        per residual block:
            m1  = A_norm @ h
            h1  = relu(m1 @ Wl1 + h @ Wr1 + bl1)    (SAGEConv 1, two dots)
            m2  = A_norm @ h1
            out = m2 @ Wl2 + h1 @ Wr2 + bl2 + shortcut(h)
            h   = relu(out)   (hidden block)  |  sigmoid(out)  (output block)
    """
    def kernel(*refs):
        o_ref = refs[-1]
        it = iter(refs[:-1])
        sim_ref = next(it)
        eps_ref = next(it)
        x_ref = next(it)
        wi_ref = next(it)
        bi_ref = next(it)

        # Row-normalized dense adjacency (computed once, reused by all layers).
        eps = eps_ref[0, 0]                                        # SMEM scalar
        adj = (sim_ref[...] >= eps).astype(jnp.float32)
        deg = jnp.sum(adj, axis=-1, keepdims=True)
        a = adj / jnp.maximum(deg, 1.0)

        # GNN input Linear + ReLU (folded into the fused kernel).
        h = jnp.dot(x_ref[...], wi_ref[...],
                    preferred_element_type=jnp.float32) + bi_ref[...]
        h = jnp.maximum(h, 0.0)

        for meta in block_meta:
            wl1 = next(it)[...]; bl1 = next(it)[...]; wr1 = next(it)[...]
            wl2 = next(it)[...]; bl2 = next(it)[...]; wr2 = next(it)[...]
            if meta["has_shortcut"]:
                ws = next(it)[...]; bs = next(it)[...]

            # conv1: mean aggregation + two accumulating MXU dots + relu
            m1 = jnp.dot(a, h, preferred_element_type=jnp.float32)
            h1 = (jnp.dot(m1, wl1, preferred_element_type=jnp.float32)
                  + jnp.dot(h, wr1, preferred_element_type=jnp.float32) + bl1)
            h1 = jnp.maximum(h1, 0.0)

            # conv2
            m2 = jnp.dot(a, h1, preferred_element_type=jnp.float32)
            out = (jnp.dot(m2, wl2, preferred_element_type=jnp.float32)
                   + jnp.dot(h1, wr2, preferred_element_type=jnp.float32) + bl2)

            # residual shortcut (Linear if dims differ, identity otherwise)
            if meta["has_shortcut"]:
                out = out + jnp.dot(h, ws,
                                    preferred_element_type=jnp.float32) + bs
            else:
                out = out + h

            if meta["is_last"]:
                out = jax.nn.sigmoid(out)
            else:
                out = jnp.maximum(out, 0.0)
            # F.dropout(p=0.0) is the identity -> skipped.
            h = out

        o_ref[...] = h
    return kernel


# ---------------------------------------------------------------------------
# Deterministic parameter initialization (shapes from the PyTorch __init__)
# ---------------------------------------------------------------------------

def _init_linear(key, fan_in, fan_out, bias=True):
    kw, kb = jax.random.split(key)
    bound = 1.0 / math.sqrt(fan_in)
    w = jax.random.uniform(kw, (fan_in, fan_out), jnp.float32, -bound, bound)
    b = (jax.random.uniform(kb, (1, fan_out), jnp.float32, -bound, bound)
         if bias else None)
    return w, b


def _init_sage(key, fan_in, fan_out):
    kl, kr = jax.random.split(key)
    wl, bl = _init_linear(kl, fan_in, fan_out, bias=True)    # lin_l (aggregated)
    wr, _ = _init_linear(kr, fan_in, fan_out, bias=False)    # lin_r (root, no bias)
    return {"wl": wl, "bl": bl, "wr": wr}


def init_gnn_params(key, input_size, hidden_layer_sizes, output_size):
    keys = iter(jax.random.split(key, 32))
    params = {}
    params["input_w"], params["input_b"] = _init_linear(
        next(keys), input_size, hidden_layer_sizes[0])
    dims = list(zip(hidden_layer_sizes[:-1], hidden_layer_sizes[1:])) \
        + [(hidden_layer_sizes[-1], output_size)]
    blocks = []
    for din, dout in dims:                      # _GraphResidualBlock per stage
        blk = {"conv1": _init_sage(next(keys), din, dout),
               "conv2": _init_sage(next(keys), dout, dout)}
        if din != dout:
            blk["shortcut"] = _init_linear(next(keys), din, dout)
        blocks.append(blk)
    params["blocks"] = blocks
    return params


# ---------------------------------------------------------------------------
# Init-time weight packing: zero-pad every hidden/output width to 128 lanes
# so all activations are lane-dense (padding is exact: extra cols stay zero).
# ---------------------------------------------------------------------------

def _pad_to(w, rows, cols):
    return jnp.pad(w, ((0, rows - w.shape[0]), (0, cols - w.shape[1])))


def pack_gnn_params(params, pad_width):
    P = pad_width
    flat = [_pad_to(params["input_w"], params["input_w"].shape[0], P),
            _pad_to(params["input_b"], 1, P)]
    meta = []
    n_blocks = len(params["blocks"])
    for bi, blk in enumerate(params["blocks"]):
        c1, c2 = blk["conv1"], blk["conv2"]
        flat += [_pad_to(c1["wl"], P, P), _pad_to(c1["bl"], 1, P),
                 _pad_to(c1["wr"], P, P),
                 _pad_to(c2["wl"], P, P), _pad_to(c2["bl"], 1, P),
                 _pad_to(c2["wr"], P, P)]
        has_sc = "shortcut" in blk
        if has_sc:
            ws, bs = blk["shortcut"]
            flat += [_pad_to(ws, P, P), _pad_to(bs, 1, P)]
        meta.append({"has_shortcut": has_sc, "is_last": bi == n_blocks - 1})
    return tuple(flat), meta


# ---------------------------------------------------------------------------
# Forward pass (use_residual=True, use_batch_norm=False -> norm is Identity,
# dropout_p=0.0 -> dropout is the identity).  Built once; jitted.
# ---------------------------------------------------------------------------

def make_gnn_forward(block_meta, alpha):
    fused_kernel = _make_fused_gnn_kernel(block_meta)

    def _vmem():
        return pl.BlockSpec(memory_space=pltpu.MemorySpace.VMEM)

    @jax.jit
    def forward(x, packed_weights):
        N = x.shape[0]
        P = packed_weights[0].shape[1]

        # --- kernel 1: |cosine| similarity matrix ---------------------------
        sim = pl.pallas_call(
            _cos_sim_kernel,
            in_specs=[_vmem()],
            out_specs=_vmem(),
            out_shape=jax.ShapeDtypeStruct((N, N), jnp.float32),
        )(x)

        # TODO(synk): the alpha-quantile (a sort/selection over N^2 values) has
        # no clean Pallas equivalent and stays as XLA glue fused inside this
        # jit; it matches torch.quantile(..., interpolation='nearest').
        sorted_sim = jnp.sort(sim.reshape(-1))
        q_idx = int(round(alpha * (N * N - 1)))
        eps = sorted_sim[q_idx].reshape(1, 1)

        # --- kernel 2: adjacency norm + input Linear + all residual blocks --
        in_specs = ([_vmem(),
                     pl.BlockSpec(memory_space=pltpu.MemorySpace.SMEM),  # eps
                     _vmem()]
                    + [_vmem()] * len(packed_weights))
        out = pl.pallas_call(
            fused_kernel,
            in_specs=in_specs,
            out_specs=_vmem(),
            out_shape=jax.ShapeDtypeStruct((N, P), jnp.float32),
        )(sim, eps, x, *packed_weights)

        return out[:, 0]                         # x.squeeze(1), output_size == 1

    return forward


# ---------------------------------------------------------------------------

if __name__ == "__main__":
    key = jax.random.PRNGKey(0)
    kx, kp = jax.random.split(key)

    N, input_size = 16, 8
    hidden_layer_sizes = [32, 32]
    output_size = 1
    alpha = 0.95

    x = jax.random.normal(kx, (N, input_size), jnp.float32)
    params = init_gnn_params(kp, input_size, hidden_layer_sizes, output_size)

    # Lane-dense padded width for every activation / the final output store.
    pad_width = _round_up(max(hidden_layer_sizes + [output_size]), LANE)
    packed_weights, block_meta = pack_gnn_params(params, pad_width)

    forward = make_gnn_forward(block_meta, alpha)

    out = forward(x, packed_weights)
    out = jax.block_until_ready(out)

    # Run again to exercise the cached executable path.
    out = jax.block_until_ready(forward(x, packed_weights))

    assert out.shape == (N,), out.shape
    assert bool(jnp.all(jnp.isfinite(out)))
    assert bool(jnp.all((out >= 0.0) & (out <= 1.0)))   # sigmoid output
    print("KERNEL_OK")
</pallas_src>

<mosaic_0001>
module attributes {stable_mosaic.version = 11 : i64} {
  func.func @_cos_sim_kernel(%arg0: memref<16x8xf32, #tpu.memory_space<vmem>>, %arg1: memref<16x16xf32, #tpu.memory_space<vmem>>) attributes {dimension_semantics = [], scalar_prefetch = 0 : i64, scratch_operands = 0 : i64, tpu.core_type = #tpu.core_type<tc>} {
    %c0 = arith.constant 0 : index
    %c0_0 = arith.constant 0 : index
    %0 = vector.load %arg0[%c0, %c0_0] : memref<16x8xf32, #tpu.memory_space<vmem>>, vector<16x8xf32>
    %1 = arith.mulf %0, %0 : vector<16x8xf32>
    %cst = arith.constant dense<0.000000e+00> : vector<16xf32>
    %2 = vector.multi_reduction <add>, %1, %cst [1] : vector<16x8xf32> to vector<16xf32>
    %3 = vector.shape_cast %2 : vector<16xf32> to vector<16x1xf32>
    %cst_1 = arith.constant 1.000000e-16 : f32
    %4 = vector.broadcast %cst_1 : f32 to vector<16x1xf32>
    %5 = arith.maximumf %3, %4 : vector<16x1xf32>
    %6 = math.rsqrt %5 : vector<16x1xf32>
    %7 = vector.broadcast %6 : vector<16x1xf32> to vector<16x8xf32>
    %8 = arith.mulf %0, %7 : vector<16x8xf32>
    %cst_2 = arith.constant dense<0.000000e+00> : vector<16x16xf32>
    %9 = tpu.matmul %8, %8, %cst_2 {dimension_numbers = #tpu.dot_dimension_numbers<[1], [1], [0], [0], [0, 0, 1, 0], [], []>} : vector<16x8xf32>, vector<16x8xf32>, vector<16x16xf32> -> vector<16x16xf32>
    %10 = math.absf %9 : vector<16x16xf32>
    %c0_3 = arith.constant 0 : index
    %c0_4 = arith.constant 0 : index
    %11 = vector.load %arg1[%c0_3, %c0_4] : memref<16x16xf32, #tpu.memory_space<vmem>>, vector<16x16xf32>
    tpu.vector_store %arg1[%c0_3, %c0_4], %10 {strides = array<i32>} : memref<16x16xf32, #tpu.memory_space<vmem>>, vector<16x16xf32>,
    return
  }
}

module attributes {stable_mosaic.version = 11 : i64} {
  func.func @kernel(%arg0: memref<16x16xf32, #tpu.memory_space<vmem>>, %arg1: memref<1x1xf32, #tpu.memory_space<smem>>, %arg2: memref<16x8xf32, #tpu.memory_space<vmem>>, %arg3: memref<8x128xf32, #tpu.memory_space<vmem>>, %arg4: memref<1x128xf32, #tpu.memory_space<vmem>>, %arg5: memref<128x128xf32, #tpu.memory_space<vmem>>, %arg6: memref<1x128xf32, #tpu.memory_space<vmem>>, %arg7: memref<128x128xf32, #tpu.memory_space<vmem>>, %arg8: memref<128x128xf32, #tpu.memory_space<vmem>>, %arg9: memref<1x128xf32, #tpu.memory_space<vmem>>, %arg10: memref<128x128xf32, #tpu.memory_space<vmem>>, %arg11: memref<128x128xf32, #tpu.memory_space<vmem>>, %arg12: memref<1x128xf32, #tpu.memory_space<vmem>>, %arg13: memref<128x128xf32, #tpu.memory_space<vmem>>, %arg14: memref<128x128xf32, #tpu.memory_space<vmem>>, %arg15: memref<1x128xf32, #tpu.memory_space<vmem>>, %arg16: memref<128x128xf32, #tpu.memory_space<vmem>>, %arg17: memref<128x128xf32, #tpu.memory_space<vmem>>, %arg18: memref<1x128xf32, #tpu.memory_space<vmem>>, %arg19: memref<16x128xf32, #tpu.memory_space<vmem>>) attributes {dimension_semantics = [], scalar_prefetch = 0 : i64, scratch_operands = 0 : i64, tpu.core_type = #tpu.core_type<tc>} {
    %c0 = arith.constant 0 : index
    %c0_0 = arith.constant 0 : index
    %0 = memref.load %arg1[%c0, %c0_0] : memref<1x1xf32, #tpu.memory_space<smem>>
    %c0_1 = arith.constant 0 : index
    %c0_2 = arith.constant 0 : index
    %1 = vector.load %arg0[%c0_1, %c0_2] : memref<16x16xf32, #tpu.memory_space<vmem>>, vector<16x16xf32>
    %2 = vector.broadcast %0 : f32 to vector<16x16xf32>
    %3 = arith.cmpf oge, %1, %2 : vector<16x16xf32>
    %4 = arith.extui %3 : vector<16x16xi1> to vector<16x16xi32>
    %5 = arith.sitofp %4 : vector<16x16xi32> to vector<16x16xf32>
    %cst = arith.constant dense<0.000000e+00> : vector<16xf32>
    %6 = vector.multi_reduction <add>, %5, %cst [1] : vector<16x16xf32> to vector<16xf32>
    %7 = vector.shape_cast %6 : vector<16xf32> to vector<16x1xf32>
    %cst_3 = arith.constant 1.000000e+00 : f32
    %8 = vector.broadcast %cst_3 : f32 to vector<16x1xf32>
    %9 = arith.maximumf %7, %8 : vector<16x1xf32>
    %10 = vector.broadcast %9 : vector<16x1xf32> to vector<16x16xf32>
    %11 = arith.divf %5, %10 : vector<16x16xf32>
    %c0_4 = arith.constant 0 : index
    %c0_5 = arith.constant 0 : index
    %12 = vector.load %arg2[%c0_4, %c0_5] : memref<16x8xf32, #tpu.memory_space<vmem>>, vector<16x8xf32>
    %c0_6 = arith.constant 0 : index
    %c0_7 = arith.constant 0 : index
    %13 = vector.load %arg3[%c0_6, %c0_7] : memref<8x128xf32, #tpu.memory_space<vmem>>, vector<8x128xf32>
    %cst_8 = arith.constant dense<0.000000e+00> : vector<16x128xf32>
    %14 = tpu.matmul %12, %13, %cst_8 {dimension_numbers = #tpu.dot_dimension_numbers<[1], [0], [0], [1], [0, 0, 1, 1], [], []>} : vector<16x8xf32>, vector<8x128xf32>, vector<16x128xf32> -> vector<16x128xf32>
    %c0_9 = arith.constant 0 : index
    %c0_10 = arith.constant 0 : index
    %15 = vector.load %arg4[%c0_9, %c0_10] : memref<1x128xf32, #tpu.memory_space<vmem>>, vector<1x128xf32>
    %16 = vector.broadcast %15 : vector<1x128xf32> to vector<16x128xf32>
    %17 = arith.addf %14, %16 : vector<16x128xf32>
    %cst_11 = arith.constant 0.000000e+00 : f32
    %18 = vector.broadcast %cst_11 : f32 to vector<16x128xf32>
    %19 = arith.maximumf %17, %18 : vector<16x128xf32>
    %c0_12 = arith.constant 0 : index
    %c0_13 = arith.constant 0 : index
    %20 = vector.load %arg5[%c0_12, %c0_13] : memref<128x128xf32, #tpu.memory_space<vmem>>, vector<128x128xf32>
    %c0_14 = arith.constant 0 : index
    %c0_15 = arith.constant 0 : index
    %21 = vector.load %arg6[%c0_14, %c0_15] : memref<1x128xf32, #tpu.memory_space<vmem>>, vector<1x128xf32>
    %c0_16 = arith.constant 0 : index
    %c0_17 = arith.constant 0 : index
    %22 = vector.load %arg7[%c0_16, %c0_17] : memref<128x128xf32, #tpu.memory_space<vmem>>, vector<128x128xf32>
    %c0_18 = arith.constant 0 : index
    %c0_19 = arith.constant 0 : index
    %23 = vector.load %arg8[%c0_18, %c0_19] : memref<128x128xf32, #tpu.memory_space<vmem>>, vector<128x128xf32>
    %c0_20 = arith.constant 0 : index
    %c0_21 = arith.constant 0 : index
    %24 = vector.load %arg9[%c0_20, %c0_21] : memref<1x128xf32, #tpu.memory_space<vmem>>, vector<1x128xf32>
    %c0_22 = arith.constant 0 : index
    %c0_23 = arith.constant 0 : index
    %25 = vector.load %arg10[%c0_22, %c0_23] : memref<128x128xf32, #tpu.memory_space<vmem>>, vector<128x128xf32>
    %cst_24 = arith.constant dense<0.000000e+00> : vector<16x128xf32>
    %26 = tpu.matmul %11, %19, %cst_24 {dimension_numbers = #tpu.dot_dimension_numbers<[1], [0], [0], [1], [0, 0, 1, 1], [], []>} : vector<16x16xf32>, vector<16x128xf32>, vector<16x128xf32> -> vector<16x128xf32>
    %cst_25 = arith.constant dense<0.000000e+00> : vector<16x128xf32>
    %27 = tpu.matmul %26, %20, %cst_25 {dimension_numbers = #tpu.dot_dimension_numbers<[1], [0], [0], [1], [0, 0, 1, 1], [], []>} : vector<16x128xf32>, vector<128x128xf32>, vector<16x128xf32> -> vector<16x128xf32>
    %cst_26 = arith.constant dense<0.000000e+00> : vector<16x128xf32>
    %28 = tpu.matmul %19, %22, %cst_26 {dimension_numbers = #tpu.dot_dimension_numbers<[1], [0], [0], [1], [0, 0, 1, 1], [], []>} : vector<16x128xf32>, vector<128x128xf32>, vector<16x128xf32> -> vector<16x128xf32>
    %29 = arith.addf %27, %28 : vector<16x128xf32>
    %30 = vector.broadcast %21 : vector<1x128xf32> to vector<16x128xf32>
    %31 = arith.addf %29, %30 : vector<16x128xf32>
    %cst_27 = arith.constant 0.000000e+00 : f32
    %32 = vector.broadcast %cst_27 : f32 to vector<16x128xf32>
    %33 = arith.maximumf %31, %32 : vector<16x128xf32>
    %cst_28 = arith.constant dense<0.000000e+00> : vector<16x128xf32>
    %34 = tpu.matmul %11, %33, %cst_28 {dimension_numbers = #tpu.dot_dimension_numbers<[1], [0], [0], [1], [0, 0, 1, 1], [], []>} : vector<16x16xf32>, vector<16x128xf32>, vector<16x128xf32> -> vector<16x128xf32>
    %cst_29 = arith.constant dense<0.000000e+00> : vector<16x128xf32>
    %35 = tpu.matmul %34, %23, %cst_29 {dimension_numbers = #tpu.dot_dimension_numbers<[1], [0], [0], [1], [0, 0, 1, 1], [], []>} : vector<16x128xf32>, vector<128x128xf32>, vector<16x128xf32> -> vector<16x128xf32>
    %cst_30 = arith.constant dense<0.000000e+00> : vector<16x128xf32>
    %36 = tpu.matmul %33, %25, %cst_30 {dimension_numbers = #tpu.dot_dimension_numbers<[1], [0], [0], [1], [0, 0, 1, 1], [], []>} : vector<16x128xf32>, vector<128x128xf32>, vector<16x128xf32> -> vector<16x128xf32>
    %37 = arith.addf %35, %36 : vector<16x128xf32>
    %38 = vector.broadcast %24 : vector<1x128xf32> to vector<16x128xf32>
    %39 = arith.addf %37, %38 : vector<16x128xf32>
    %40 = arith.addf %39, %19 : vector<16x128xf32>
    %cst_31 = arith.constant 0.000000e+00 : f32
    %41 = vector.broadcast %cst_31 : f32 to vector<16x128xf32>
    %42 = arith.maximumf %40, %41 : vector<16x128xf32>
    %c0_32 = arith.constant 0 : index
    %c0_33 = arith.constant 0 : index
    %43 = vector.load %arg11[%c0_32, %c0_33] : memref<128x128xf32, #tpu.memory_space<vmem>>, vector<128x128xf32>
    %c0_34 = arith.constant 0 : index
    %c0_35 = arith.constant 0 : index
    %44 = vector.load %arg12[%c0_34, %c0_35] : memref<1x128xf32, #tpu.memory_space<vmem>>, vector<1x128xf32>
    %c0_36 = arith.constant 0 : index
    %c0_37 = arith.constant 0 : index
    %45 = vector.load %arg13[%c0_36, %c0_37] : memref<128x128xf32, #tpu.memory_space<vmem>>, vector<128x128xf32>
    %c0_38 = arith.constant 0 : index
    %c0_39 = arith.constant 0 : index
    %46 = vector.load %arg14[%c0_38, %c0_39] : memref<128x128xf32, #tpu.memory_space<vmem>>, vector<128x128xf32>
    %c0_40 = arith.constant 0 : index
    %c0_41 = arith.constant 0 : index
    %47 = vector.load %arg15[%c0_40, %c0_41] : memref<1x128xf32, #tpu.memory_space<vmem>>, vector<1x128xf32>
    %c0_42 = arith.constant 0 : index
    %c0_43 = arith.constant 0 : index
    %48 = vector.load %arg16[%c0_42, %c0_43] : memref<128x128xf32, #tpu.memory_space<vmem>>, vector<128x128xf32>
    %c0_44 = arith.constant 0 : index
    %c0_45 = arith.constant 0 : index
    %49 = vector.load %arg17[%c0_44, %c0_45] : memref<128x128xf32, #tpu.memory_space<vmem>>, vector<128x128xf32>
    %c0_46 = arith.constant 0 : index
    %c0_47 = arith.constant 0 : index
    %50 = vector.load %arg18[%c0_46, %c0_47] : memref<1x128xf32, #tpu.memory_space<vmem>>, vector<1x128xf32>
    %cst_48 = arith.constant dense<0.000000e+00> : vector<16x128xf32>
    %51 = tpu.matmul %11, %42, %cst_48 {dimension_numbers = #tpu.dot_dimension_numbers<[1], [0], [0], [1], [0, 0, 1, 1], [], []>} : vector<16x16xf32>, vector<16x128xf32>, vector<16x128xf32> -> vector<16x128xf32>
    %cst_49 = arith.constant dense<0.000000e+00> : vector<16x128xf32>
    %52 = tpu.matmul %51, %43, %cst_49 {dimension_numbers = #tpu.dot_dimension_numbers<[1], [0], [0], [1], [0, 0, 1, 1], [], []>} : vector<16x128xf32>, vector<128x128xf32>, vector<16x128xf32> -> vector<16x128xf32>
    %cst_50 = arith.constant dense<0.000000e+00> : vector<16x128xf32>
    %53 = tpu.matmul %42, %45, %cst_50 {dimension_numbers = #tpu.dot_dimension_numbers<[1], [0], [0], [1], [0, 0, 1, 1], [], []>} : vector<16x128xf32>, vector<128x128xf32>, vector<16x128xf32> -> vector<16x128xf32>
    %54 = arith.addf %52, %53 : vector<16x128xf32>
    %55 = vector.broadcast %44 : vector<1x128xf32> to vector<16x128xf32>
    %56 = arith.addf %54, %55 : vector<16x128xf32>
    %cst_51 = arith.constant 0.000000e+00 : f32
    %57 = vector.broadcast %cst_51 : f32 to vector<16x128xf32>
    %58 = arith.maximumf %56, %57 : vector<16x128xf32>
    %cst_52 = arith.constant dense<0.000000e+00> : vector<16x128xf32>
    %59 = tpu.matmul %11, %58, %cst_52 {dimension_numbers = #tpu.dot_dimension_numbers<[1], [0], [0], [1], [0, 0, 1, 1], [], []>} : vector<16x16xf32>, vector<16x128xf32>, vector<16x128xf32> -> vector<16x128xf32>
    %cst_53 = arith.constant dense<0.000000e+00> : vector<16x128xf32>
    %60 = tpu.matmul %59, %46, %cst_53 {dimension_numbers = #tpu.dot_dimension_numbers<[1], [0], [0], [1], [0, 0, 1, 1], [], []>} : vector<16x128xf32>, vector<128x128xf32>, vector<16x128xf32> -> vector<16x128xf32>
    %cst_54 = arith.constant dense<0.000000e+00> : vector<16x128xf32>
    %61 = tpu.matmul %58, %48, %cst_54 {dimension_numbers = #tpu.dot_dimension_numbers<[1], [0], [0], [1], [0, 0, 1, 1], [], []>} : vector<16x128xf32>, vector<128x128xf32>, vector<16x128xf32> -> vector<16x128xf32>
    %62 = arith.addf %60, %61 : vector<16x128xf32>
    %63 = vector.broadcast %47 : vector<1x128xf32> to vector<16x128xf32>
    %64 = arith.addf %62, %63 : vector<16x128xf32>
    %cst_55 = arith.constant dense<0.000000e+00> : vector<16x128xf32>
    %65 = tpu.matmul %42, %49, %cst_55 {dimension_numbers = #tpu.dot_dimension_numbers<[1], [0], [0], [1], [0, 0, 1, 1], [], []>} : vector<16x128xf32>, vector<128x128xf32>, vector<16x128xf32> -> vector<16x128xf32>
    %66 = arith.addf %64, %65 : vector<16x128xf32>
    %67 = vector.broadcast %50 : vector<1x128xf32> to vector<16x128xf32>
    %68 = arith.addf %66, %67 : vector<16x128xf32>
    %69 = arith.negf %68 : vector<16x128xf32>
    %70 = math.exp %69 : vector<16x128xf32>
    %cst_56 = arith.constant 1.000000e+00 : f32
    %71 = vector.broadcast %cst_56 : f32 to vector<16x128xf32>
    %72 = arith.addf %71, %70 : vector<16x128xf32>
    %73 = arith.divf %71, %72 : vector<16x128xf32>
    %c0_57 = arith.constant 0 : index
    %c0_58 = arith.constant 0 : index
    %74 = vector.load %arg19[%c0_57, %c0_58] : memref<16x128xf32, #tpu.memory_space<vmem>>, vector<16x128xf32>
    tpu.vector_store %arg19[%c0_57, %c0_58], %73 {strides = array<i32>} : memref<16x128xf32, #tpu.memory_space<vmem>>, vector<16x128xf32>,
    return
  }
}

</mosaic_0001>

<bundles_post_ra>
// kernel: forward.2
= control target key start
LH: loop header
LB: loop body
LE: loop exit
PB: predicated region body
PF: predicated region fallthrough
CT: control target
= control target key end

     0   :  { %vm12_vm0 = vcmask 64512   ;;  %vm74_vm7 = vcmask 130048   ;;  %s121_s0 = inlined_call_operand.vmem [shape: f32[16,8], index: 0, kind: input, shape index: {}]   ;;  %s122_s1 = inlined_call_operand.vmem [shape: f32[16,16], index: 1, kind: output, shape index: {}]  }
   0x1   :  { %v9_v0 = vld [vmem:[%s121_s0 + $0x8] sm:$0xff]  ;;  %v8_v2 = vld [vmem:[%s121_s0] sm:$0xff] }
   0x2   :  { %v11_v1 = vmul.f32 %v9_v0, %v9_v0  ;;  %v10_v4 = vmul.f32 %v8_v2, %v8_v2 }
   0x4   :  { %v16_v3 = vsel %vm12_vm0, %v11_v1, 0.0  ;;  %v13_v5 = vsel %vm12_vm0, %v10_v4, 0.0 }
   0x5   :  { %17 = vadd.xlane.f32.xlu0 %v16_v3 }
   0xd   :  { %14 = vadd.xlane.f32.xlu0 %v13_v5 }
  0x78   :  { %v18_v6 = vpop.xlane.xlu0 %17 }
  0x79   :  { %v20_v7 = vmax.f32 %v18_v6, 1e-16 }
  0x7b   :  { %87 = vrsqrt.f32 %v20_v7  ;;  %vm37_vm2 = vweird.f32 %v20_v7 }
  0x80   :  { %v15_v8 = vpop.xlane.xlu0 %14 }
  0x81   :  { %v88_v9 = vpop.eup %87  ;;  %v19_v10 = vmax.f32 %v15_v8, 1e-16 }
  0x82   :  { %v32_v11 = vmul.f32 %v88_v9, %v20_v7  ;;  %vm38_vm1 = vweird.f32 %v88_v9 }
  0x83   :  { %89 = vrsqrt.f32 %v19_v10  ;;  %vm39_vm3 = vmor %vm37_vm2, %vm38_vm1  ;;  %vm27_vm5 = vweird.f32 %v19_v10 }
  0x84   :  { %v33_v12 = vmul.f32 %v88_v9, %v32_v11 }
  0x86   :  { %v34_v13 = vmul.f32 0.5, %v33_v12 }
  0x88   :  { %v35_v14 = vsub.f32 1.5, %v34_v13 }
  0x89   :  { %v90_v15 = vpop.eup %89 }
  0x8a   :  { %v22_v16 = vmul.f32 %v90_v15, %v19_v10  ;;  %v36_v17 = vmul.f32 %v88_v9, %v35_v14  ;;  %vm28_vm4 = vweird.f32 %v90_v15 }
  0x8b   :  { %vm29_vm6 = vmor %vm27_vm5, %vm28_vm4 }
  0x8c   :  { %v23_v18 = vmul.f32 %v90_v15, %v22_v16  ;;  %v40_v19 = vsel %vm39_vm3, %v88_v9, %v36_v17 }
  0x8d   :  { %v42_v20 = vmul.f32 %v40_v19, %v9_v0 }
  0x8e   :  { %v24_v21 = vmul.f32 0.5, %v23_v18 }
  0x8f   :  { %81 = vmatpush.xpose.msk.msra.mxu0 %vm12_vm0, %v42_v20  ;;  %85 = vmatpush.xpose.msk.msra.mxu1 %vm12_vm0, %v42_v20 }
  0x90   :  { %v25_v22 = vsub.f32 1.5, %v24_v21 }
  0x92   :  { %v26_v23 = vmul.f32 %v90_v15, %v25_v22 }
  0x94   :  { %v30_v24 = vsel %vm29_vm6, %v90_v15, %v26_v23 }
  0x95   :  { %v41_v25 = vmul.f32 %v30_v24, %v8_v2 }
  0x97   :  { %82 = vmatpush.xpose.msk.msra.mxu0 %vm12_vm0, %v41_v25  ;;  %86 = vmatpush.xpose.msk.msra.mxu1 %vm12_vm0, %v41_v25 }
  0x9a   :  { %83 = vmatmul.msk.f32.vlgmr.msra.gmra.mxu0 %vm12_vm0, %v41_v25  ;;  %84 = vmatmul.msk.f32.vlgmr.msra.gmra.mxu1 %vm12_vm0, %v42_v20 }
 0x117   :  { %v66_v26 = vpop.f32.mrf.mxu0  ;;  %v69_v27 = vpop.f32.mrf.mxu1 }
 0x118   :  { %v72_v28 = vand.u32 2147483647, %v66_v26  ;;  %v73_v29 = vand.u32 2147483647, %v69_v27 }
 0x11a   :  { %75 = vst.msk [vmem:[%s122_s1] sm:$0xff] %vm74_vm7, %v72_v28 }
 0x11b   :  { %76 = vst.msk [vmem:[%s122_s1 + $0x8] sm:$0xff] %vm74_vm7, %v73_v29 }

// kernel: forward.3
= control target key start
LH: loop header
LB: loop body
LE: loop exit
PB: predicated region body
PF: predicated region fallthrough
CT: control target
= control target key end

     0   :  { %s1349_s0 = inlined_call_operand.vmem [shape: f32[16,16], index: 0, kind: input, shape index: {}]   ;;  %s1350_s1 = inlined_call_operand.<no memory space> [shape: f32[1,1], index: 1, kind: input, shape index: {}]   ;;  %s1351_s2 = inlined_call_operand.vmem [shape: f32[16,8], index: 2, kind: input, shape index: {}]   ;;  %s1352_s3 = inlined_call_operand.vmem [shape: f32[8,128], index: 3, kind: input, shape index: {}]   ;;  %s1353_s4 = inlined_call_operand.vmem [shape: f32[1,128], index: 4, kind: input, shape index: {}]   ;;  %s1354_s5 = inlined_call_operand.hbm [shape: f32[128,128], index: 5, kind: input, shape index: {}]   ;;  %s1355_s6 = inlined_call_operand.vmem [shape: f32[1,128], index: 6, kind: input, shape index: {}]   ;;  %s1356_s7 = inlined_call_operand.hbm [shape: f32[128,128], index: 7, kind: input, shape index: {}]   ;;  %s1357_s8 = inlined_call_operand.hbm [shape: f32[128,128], index: 8, kind: input, shape index: {}]   ;;  %s1358_s9 = inlined_call_operand.vmem [shape: f32[1,128], index: 9, kind: input, shape index: {}]   ;;  %s1359_s10 = inlined_call_operand.hbm [shape: f32[128,128], index: 10, kind: input, shape index: {}]   ;;  %s1360_s11 = inlined_call_operand.hbm [shape: f32[128,128], index: 11, kind: input, shape index: {}]   ;;  %s1361_s12 = inlined_call_operand.vmem [shape: f32[1,128], index: 12, kind: input, shape index: {}]   ;;  %s1362_s13 = inlined_call_operand.hbm [shape: f32[128,128], index: 13, kind: input, shape index: {}]   ;;  %s1363_s14 = inlined_call_operand.hbm [shape: f32[128,128], index: 14, kind: input, shape index: {}]   ;;  %s1364_s15 = inlined_call_operand.vmem [shape: f32[1,128], index: 15, kind: input, shape index: {}]   ;;  %s1365_s16 = inlined_call_operand.hbm [shape: f32[128,128], index: 16, kind: input, shape index: {}]   ;;  %s1366_s17 = inlined_call_operand.hbm [shape: f32[128,128], index: 17, kind: input, shape index: {}]   ;;  %s1367_s18 = inlined_call_operand.vmem [shape: f32[1,128], index: 18, kind: input, shape index: {}]   ;;  %s1368_s19 = inlined_call_operand.vmem [shape: f32[16,128], index: 19, kind: output, shape index: {}]  }
   0x1   :  { %1371 = sst [smem:[#allocation22_spill]] %s1349_s0 }
   0x2   :  { %1372 = sst [smem:[#allocation23_spill]] %s1350_s1 }
   0x3   :  { %1373 = sst [smem:[#allocation24_spill]] %s1351_s2 }
   0x4   :  { %1374 = sst [smem:[#allocation25_spill]] %s1352_s3 }
   0x5   :  { %25 = vsyncpa [#allocation4], 0 }
   0x6   :  { %26 = vsyncpa [#allocation6], 0 }
   0x7   :  { %27 = vsyncpa [#allocation9], 0 }
   0x8   :  { %28 = vsyncpa [#allocation12], 0 }
   0x9   :  { %29 = vsyncpa [#allocation15], 0  ;;  %s59_s20 = sshll.u32 %s1356_s7, 4  ;;  %s1099_s21 = smov [#allocation5]   ;;  %s60_s20 = int_to_ptr.hbm [resolvable:$true] %s59_s20 }
   0xa   :  { %s61_s1 = sshll.u32 %s1099_s21, 4  ;;  %s87_s23 = sshll.u32 %s1359_s10, 4  ;;  %s62_s1 = int_to_ptr.vmem [resolvable:$true] %s61_s1  ;;  %s88_s23 = int_to_ptr.hbm [resolvable:$true] %s87_s23 }
   0xb   :  { %s1100_s24 = smov 128   ;;  %s1101_s25 = smov 8  }
   0xc   :  { %67 = dma.hbm_to_vmem [thread:$0]  %s60_s20, 2048, %s62_s1, [#allocation6], %s1100_s24, %s1100_s24, %s1101_s25  }
   0xd   :  { %s1102_s3 = smov [#allocation8]   ;;  %s115_s7 = sshll.u32 %s1362_s13, 4  ;;  %s116_s7 = int_to_ptr.hbm [resolvable:$true] %s115_s7 }
   0xe   :  { %s89_s26 = sshll.u32 %s1102_s3, 4  ;;  %s143_s0 = sshll.u32 %s1365_s16, 4  ;;  %s90_s26 = int_to_ptr.vmem [resolvable:$true] %s89_s26  ;;  %s144_s0 = int_to_ptr.hbm [resolvable:$true] %s143_s0 }
   0xf   :  { %95 = dma.hbm_to_vmem [thread:$0]  %s88_s23, 2048, %s90_s26, [#allocation9], %s1100_s24, %s1100_s24, %s1101_s25  }
  0x10   :  { %s1103_s30 = smov [#allocation11]   ;;  %s1104_s20 = smov [#allocation14]  }
  0x11   :  { %s117_s21 = sshll.u32 %s1103_s30, 4  ;;  %s145_s13 = sshll.u32 %s1104_s20, 4  ;;  %s118_s21 = int_to_ptr.vmem [resolvable:$true] %s117_s21  ;;  %s146_s13 = int_to_ptr.vmem [resolvable:$true] %s145_s13 }
  0x12   :  { %123 = dma.hbm_to_vmem [thread:$0]  %s116_s7, 2048, %s118_s21, [#allocation12], %s1100_s24, %s1100_s24, %s1101_s25  }
  0x13   :  { %s44_s2 = sshll.u32 %s1354_s5, 4  ;;  %s72_s3 = sshll.u32 %s1357_s8, 4  ;;  %s45_s2 = int_to_ptr.hbm [resolvable:$true] %s44_s2  ;;  %s73_s3 = int_to_ptr.hbm [resolvable:$true] %s72_s3 }
  0x14   :  { %151 = dma.hbm_to_vmem [thread:$0]  %s144_s0, 2048, %s146_s13, [#allocation15], %s1100_s24, %s1100_s24, %s1101_s25  }
  0x15   :  { %s1105_s26 = smov [#allocation3]   ;;  %s1106_s28 = smov [#allocation7]  }
  0x16   :  { %s46_s27 = sshll.u32 %s1105_s26, 4  ;;  %s74_s5 = sshll.u32 %s1106_s28, 4  ;;  %s47_s27 = int_to_ptr.vmem [resolvable:$true] %s46_s27  ;;  %s75_s5 = int_to_ptr.vmem [resolvable:$true] %s74_s5 }
  0x17   :  { %52 = dma.hbm_to_vmem [thread:$0]  %s45_s2, 2048, %s47_s27, [#allocation4], %s1100_s24, %s1100_s24, %s1101_s25  }
  0x18   :  { %s100_s29 = sshll.u32 %s1360_s11, 4  ;;  %s128_s30 = sshll.u32 %s1363_s14, 4  ;;  %s101_s29 = int_to_ptr.hbm [resolvable:$true] %s100_s29  ;;  %s129_s30 = int_to_ptr.hbm [resolvable:$true] %s128_s30 }
  0x19   :  { %80 = dma.hbm_to_vmem [thread:$0]  %s73_s3, 2048, %s75_s5, [#allocation6], %s1100_s24, %s1100_s24, %s1101_s25  }
  0x1a   :  { %s1107_s21 = smov [#allocation10]   ;;  %s1108_s13 = smov [#allocation13]  }
  0x1b   :  { %s102_s20 = sshll.u32 %s1107_s21, 4  ;;  %s130_s11 = sshll.u32 %s1108_s13, 4  ;;  %s103_s20 = int_to_ptr.vmem [resolvable:$true] %s102_s20  ;;  %s131_s11 = int_to_ptr.vmem [resolvable:$true] %s130_s11 }
  0x1c   :  { %108 = dma.hbm_to_vmem [thread:$0]  %s101_s29, 2048, %s103_s20, [#allocation9], %s1100_s24, %s1100_s24, %s1101_s25  }
  0x1d   :  { %s156_s2 = sshll.u32 %s1366_s17, 4  ;;  %s1109_s14 = smov [#allocation16]   ;;  %s157_s2 = int_to_ptr.hbm [resolvable:$true] %s156_s2 }
  0x1e   :  { %136 = dma.hbm_to_vmem [thread:$0]  %s129_s30, 2048, %s131_s11, [#allocation12], %s1100_s24, %s1100_s24, %s1101_s25  }
  0x1f   :  { %s158_s16 = sshll.u32 %s1109_s14, 4  ;;  %s159_s16 = int_to_ptr.vmem [resolvable:$true] %s158_s16 }
  0x20   :  { %164 = dma.hbm_to_vmem [thread:$0]  %s157_s2, 2048, %s159_s16, [#allocation15], %s1100_s24, %s1100_s24, %s1101_s25  }
  0x21   :  { %1089 = dma.done.wait [#allocation4], 2048  }
  0x22   :  { %1090 = vsyncadd [#allocation4], 4294965248 }
  0x23   :  { %1091 = dma.done.wait [#allocation6], 4096  }
  0x24   :  { %1092 = vsyncadd [#allocation6], 4294963200 }
  0x25   :  { %1093 = dma.done.wait [#allocation9], 4096  }
  0x26   :  { %1094 = vsyncadd [#allocation9], 4294963200 }
  0x27   :  { %1095 = dma.done.wait [#allocation12], 4096  }
  0x28   :  { %1096 = vsyncadd [#allocation12], 4294963200 }
  0x29   :  { %1097 = dma.done.wait [#allocation15], 4096  }
  0x2a   :  { %1098 = vsyncadd [#allocation15], 4294963200  ;;  %s1375_s3 = sld [smem:[#allocation23_spill]]  ;;  %vm259_vm0 = vcmask 64512   ;;  %vm213_vm1 = vcmask 130048   ;;  %v323_v5 = vld [vmem:[#allocation5 + $0x78] sm:$0xff] }
  0x2b   :  { %s1376_s28 = sld [smem:[#allocation25_spill]]  ;;  %v1110_v6 = vmov 0.0   ;;  %386 = vmatpush.msra.mxu2 %v323_v5  ;;  %v322_v8 = vld [vmem:[#allocation5 + $0x70] sm:$0xff]  ;;  %v321_v10 = vld [vmem:[#allocation5 + $0x68] sm:$0xff]  ;;  %v320_v12 = vld [vmem:[#allocation5 + $0x60] sm:$0xff] }
  0x2c   :  { %s1377_s5 = sld [smem:[#allocation24_spill]]  ;;  %v319_v14 = vld [vmem:[#allocation5 + $0x58] sm:$0xff]  ;;  %v318_v16 = vld [vmem:[#allocation5 + $0x50] sm:$0xff]  ;;  %v317_v17 = vld [vmem:[#allocation5 + $0x48] sm:$0xff] }
  0x2d   :  { %s1378_s29 = sld [smem:[#allocation22_spill]]  ;;  %387 = vmatpush.msra.mxu2 %v322_v8  ;;  %v316_v18 = vld [vmem:[#allocation5 + $0x40] sm:$0xff]  ;;  %v315_v19 = vld [vmem:[#allocation5 + $0x38] sm:$0xff]  ;;  %v314_v20 = vld [vmem:[#allocation5 + $0x30] sm:$0xff] }
  0x2e   :  { %v313_v21 = vld [vmem:[#allocation5 + $0x28] sm:$0xff]  ;;  %v312_v22 = vld [vmem:[#allocation5 + $0x20] sm:$0xff]  ;;  %v311_v23 = vld [vmem:[#allocation5 + $0x18] sm:$0xff] }
  0x2f   :  { %388 = vmatpush.msra.mxu2 %v321_v10  ;;  %v310_v24 = vld [vmem:[#allocation5 + $0x10] sm:$0xff]  ;;  %v309_v25 = vld [vmem:[#allocation5 + $0x8] sm:$0xff]  ;;  %v308_v26 = vld [vmem:[#allocation5] sm:$0xff] }
  0x30   :  { %v206_v0 = vstv %s1375_s3  ;;  %v306_v28 = vld [vmem:[#allocation3 + $0x78] sm:$0xff]  ;;  %v305_v29 = vld [vmem:[#allocation3 + $0x70] sm:$0xff]  ;;  %v304_v31 = vld [vmem:[#allocation3 + $0x68] sm:$0xff] }
  0x31   :  { %v254_v1 = vld [vmem:[%s1376_s28] sm:$0xff]  ;;  %389 = vmatpush.msra.mxu2 %v320_v12  ;;  %409 = vmatpush.msra.mxu3 %v306_v28  ;;  %v302_v34 = vld [vmem:[#allocation3 + $0x58] sm:$0xff]  ;;  %v301_v37 = vld [vmem:[#allocation3 + $0x50] sm:$0xff] }
  0x32   :  { %v252_v2 = vld [vmem:[%s1377_s5] sm:$0xff]  ;;  %281 = vmatpush.msra.mxu0 %v254_v1  ;;  %v253_v13 = vld [vmem:[%s1377_s5 + $0x8] sm:$0xff]  ;;  %v298_v49 = vld [vmem:[#allocation3 + $0x38] sm:$0xff] }
  0x33   :  { %v204_v3 = vld [vmem:[%s1378_s29] sm:$0xff]  ;;  %v205_v4 = vld [vmem:[%s1378_s29 + $0x8] sm:$0xff]  ;;  %831 = vmatmul.msk.f32.vlgmr.msra.gmra.mxu0 %vm259_vm0, %v252_v2  ;;  %390 = vmatpush.msra.mxu2 %v319_v14  ;;  %v297_v52 = vld [vmem:[#allocation3 + $0x30] sm:$0xff] }
  0x34   :  { %vm207_vm2 = vcmp.ge.f32.partialorder %v204_v3, %v206_v0  ;;  %vm208_vm3 = vcmp.ge.f32.partialorder %v205_v4, %v206_v0  ;;  %410 = vmatpush.msra.mxu3 %v305_v29  ;;  %v303_v32 = vld [vmem:[#allocation3 + $0x60] sm:$0xff]  ;;  %v300_v42 = vld [vmem:[#allocation3 + $0x48] sm:$0xff]  ;;  %v294_v3 = vld [vmem:[#allocation3 + $0x18] sm:$0xff] }
  0x35   :  { %v1281_v7 = vsel %vm207_vm2, 1.0, %v1110_v6  ;;  %v1285_v11 = vsel %vm208_vm3, 1.0, %v1110_v6  ;;  %391 = vmatpush.msra.mxu2 %v318_v16  ;;  %v855_v33 = vld [vmem:[%s1353_s4] ss:$0 sm:$0xff]  ;;  %v296_v60 = vld [vmem:[#allocation3 + $0x28] sm:$0xff]  ;;  %v355_v14 = vld [vmem:[#allocation8 + $0x70] sm:$0xff] }
  0x36   :  { %v214_v9 = vsel %vm213_vm1, %v1281_v7, 0.0  ;;  %v217_v15 = vsel %vm213_vm1, %v1285_v11, 0.0  ;;  %411 = vmatpush.msra.mxu3 %v304_v31  ;;  %v299_v45 = vld [vmem:[#allocation3 + $0x40] sm:$0xff]  ;;  %v292_v10 = vld [vmem:[#allocation3 + $0x8] sm:$0xff] }
  0x37   :  { %215 = vadd.xlane.f32.xlu0 %v214_v9  ;;  %392 = vmatpush.msra.mxu2 %v317_v17  ;;  %v295_v63 = vld [vmem:[#allocation3 + $0x20] sm:$0xff]  ;;  %v293_v9 = vld [vmem:[#allocation3 + $0x10] sm:$0xff]  ;;  %v352_v17 = vld [vmem:[#allocation8 + $0x58] sm:$0xff] }
  0x38   :  { %412 = vmatpush.msra.mxu3 %v303_v32  ;;  %v291_v12 = vld [vmem:[#allocation3] sm:$0xff]  ;;  %v342_v28 = vld [vmem:[#allocation8 + $0x8] sm:$0xff] }
  0x39   :  { %393 = vmatpush.msra.mxu2 %v316_v18  ;;  %v353_v16 = vld [vmem:[#allocation8 + $0x60] sm:$0xff]  ;;  %v350_v18 = vld [vmem:[#allocation8 + $0x48] sm:$0xff] }
  0x3a   :  { %413 = vmatpush.msra.mxu3 %v302_v34  ;;  %v341_v29 = vld [vmem:[#allocation8] sm:$0xff] }
  0x3b   :  { %832 = vmatmul.msk.f32.gmra.mxu0 %vm259_vm0, %v253_v13  ;;  %394 = vmatpush.msra.mxu2 %v315_v19  ;;  %v356_v13 = vld [vmem:[#allocation8 + $0x78] sm:$0xff]  ;;  %v349_v19 = vld [vmem:[#allocation8 + $0x40] sm:$0xff] }
  0x3c   :  { %414 = vmatpush.msra.mxu3 %v301_v37  ;;  %v856_v31 = vld [vmem:[%s1355_s6] ss:$0 sm:$0xff] }
  0x3d   :  { %395 = vmatpush.msra.mxu2 %v314_v20  ;;  %v348_v20 = vld [vmem:[#allocation8 + $0x38] sm:$0xff] }
  0x3e   :  { %415 = vmatpush.msra.mxu3 %v300_v42  ;;  %v338_v42 = vld [vmem:[#allocation7 + $0x70] sm:$0xff] }
  0x3f   :  { %218 = vadd.xlane.f32.xlu0 %v217_v15  ;;  %396 = vmatpush.msra.mxu2 %v313_v21  ;;  %v354_v15 = vld [vmem:[#allocation8 + $0x68] sm:$0xff]  ;;  %v347_v21 = vld [vmem:[#allocation8 + $0x30] sm:$0xff] }
  0x40   :  { %416 = vmatpush.msra.mxu3 %v299_v45  ;;  %v336_v45 = vld [vmem:[#allocation7 + $0x60] sm:$0xff] }
  0x41   :  { %397 = vmatpush.msra.mxu2 %v312_v22  ;;  %v346_v22 = vld [vmem:[#allocation8 + $0x28] sm:$0xff] }
  0x42   :  { %417 = vmatpush.msra.mxu3 %v298_v49  ;;  %v332_v49 = vld [vmem:[#allocation7 + $0x40] sm:$0xff] }
  0x43   :  { %398 = vmatpush.msra.mxu2 %v311_v23  ;;  %v345_v23 = vld [vmem:[#allocation8 + $0x20] sm:$0xff] }
  0x44   :  { %418 = vmatpush.msra.mxu3 %v297_v52  ;;  %v329_v52 = vld [vmem:[#allocation7 + $0x28] sm:$0xff] }
  0x45   :  { %399 = vmatpush.msra.mxu2 %v310_v24 }
  0x46   :  { %419 = vmatpush.msra.mxu3 %v296_v60  ;;  %v548_v60 = vld [vmem:[#allocation11 + $0x70] sm:$0xff] }
  0x47   :  { %400 = vmatpush.msra.mxu2 %v309_v25 }
  0x48   :  { %420 = vmatpush.msra.mxu3 %v295_v63  ;;  %v545_v63 = vld [vmem:[#allocation11 + $0x58] sm:$0xff] }
  0x49   :  { %401 = vmatpush.msra.mxu2 %v308_v26  ;;  %v344_v26 = vld [vmem:[#allocation8 + $0x18] sm:$0xff] }
  0x4a   :  { %421 = vmatpush.msra.mxu3 %v294_v3  ;;  %v542_v3 = vld [vmem:[#allocation11 + $0x40] sm:$0xff] }
  0x4c   :  { %422 = vmatpush.msra.mxu3 %v293_v9  ;;  %v537_v9 = vld [vmem:[#allocation11 + $0x18] sm:$0xff] }
  0x4e   :  { %423 = vmatpush.msra.mxu3 %v292_v10 }
  0x50   :  { %424 = vmatpush.msra.mxu3 %v291_v12  ;;  %v536_v12 = vld [vmem:[#allocation11 + $0x10] sm:$0xff] }
  0xaa   :  { %v216_v27 = vpop.xlane.xlu0 %215 }
  0xab   :  { %v220_v30 = vmax.f32 %v216_v27, 1.0  ;;  %v343_v27 = vld [vmem:[#allocation8 + $0x10] sm:$0xff] }
  0xad   :  { %861 = vrcp.f32 %v220_v30  ;;  %v233_v46 = vand.u32 2147483648, %v220_v30  ;;  %v231_v48 = vand.u32 2147483647, %v220_v30  ;;  %vm227_vm5 = vweird.f32 %v220_v30 }
  0xaf   :  { %v234_v55 = vor.u32 1.1754944e-38, %v233_v46  ;;  %vm232_vm7 = vcmp.eq.f32.partialorder %v231_v48, 8.507059e+37  ;;  %v335_v46 = vld [vmem:[#allocation7 + $0x58] sm:$0xff]  ;;  %v333_v48 = vld [vmem:[#allocation7 + $0x48] sm:$0xff] }
  0xb0   :  { %v283_v35 = vpop.f32.mrf.mxu0 }
  0xb1   :  { %v284_v39 = vadd.f32 %v855_v33, %v283_v35 }
  0xb2   :  { %v219_v36 = vpop.xlane.xlu0 %218 }
  0xb3   :  { %v862_v38 = vpop.eup %861  ;;  %v221_v40 = vmax.f32 %v219_v36, 1.0  ;;  %v1296_v43 = vmax.f32 %v284_v39, 0.0 }
  0xb4   :  { %v223_v41 = vmul.f32 %v862_v38, %v220_v30  ;;  %vm228_vm4 = vweird.f32 %v862_v38 }
  0xb5   :  { %863 = vrcp.f32 %v221_v40  ;;  %402 = vmatmul.f32.vlgmr.msra.gmra.mxu2 %v1296_v43  ;;  %vm229_vm6 = vmor %vm227_vm5, %vm228_vm4  ;;  %v248_v62 = vand.u32 2147483648, %v221_v40  ;;  %v246_v2 = vand.u32 2147483647, %v221_v40  ;;  %vm242_vm9 = vweird.f32 %v221_v40 }
  0xb6   :  { %v224_v44 = vsub.f32 1.0, %v223_v41  ;;  %v339_v41 = vld [vmem:[#allocation7 + $0x78] sm:$0xff] }
  0xb7   :  { %v249_v5 = vor.u32 1.1754944e-38, %v248_v62  ;;  %vm247_vm11 = vcmp.eq.f32.partialorder %v246_v2, 8.507059e+37  ;;  %v546_v62 = vld [vmem:[#allocation11 + $0x60] sm:$0xff]  ;;  %v543_v2 = vld [vmem:[#allocation11 + $0x48] sm:$0xff] }
  0xb8   :  { %v225_v47 = vmul.f32 %v862_v38, %v224_v44  ;;  %v286_v50 = vpop.f32.mrf.mxu0  ;;  %v337_v44 = vld [vmem:[#allocation7 + $0x68] sm:$0xff] }
  0xb9   :  { %v287_v54 = vadd.f32 %v855_v33, %v286_v50  ;;  %v331_v50 = vld [vmem:[#allocation7 + $0x38] sm:$0xff] }
  0xba   :  { %v226_v51 = vadd.f32 %v862_v38, %v225_v47  ;;  %v334_v47 = vld [vmem:[#allocation7 + $0x50] sm:$0xff] }
  0xbb   :  { %v864_v53 = vpop.eup %863  ;;  %v1299_v58 = vmax.f32 %v287_v54, 0.0  ;;  %v327_v54 = vld [vmem:[#allocation7 + $0x18] sm:$0xff] }
  0xbc   :  { %v238_v56 = vmul.f32 %v864_v53, %v221_v40  ;;  %v230_v57 = vsel %vm229_vm6, %v862_v38, %v226_v51  ;;  %vm243_vm8 = vweird.f32 %v864_v53  ;;  %v330_v51 = vld [vmem:[#allocation7 + $0x30] sm:$0xff] }
  0xbd   :  { %v235_v59 = vsel %vm232_vm7, %v234_v55, %v230_v57  ;;  %377 = vmatpush.msra.mxu1 %v1299_v58  ;;  %405 = vmatmul.f32.gmra.mxu2 %v1299_v58  ;;  %vm244_vm10 = vmor %vm242_vm9, %vm243_vm8  ;;  %v326_v55 = vld [vmem:[#allocation7 + $0x10] sm:$0xff]  ;;  %v324_v57 = vld [vmem:[#allocation7] sm:$0xff] }
  0xbe   :  { %v239_v61 = vsub.f32 1.0, %v238_v56  ;;  %v1304_v1 = vmul.f32 %v1281_v7, %v235_v59  ;;  %v325_v56 = vld [vmem:[#allocation7 + $0x8] sm:$0xff]  ;;  %v549_v59 = vld [vmem:[#allocation11 + $0x78] sm:$0xff] }
  0xbf   :  { %378 = vmatpush.msra.mxu1 %v1296_v43  ;;  %623 = vmatpush.msrb.mxu3 %v549_v59  ;;  %v517_v59 = vld [vmem:[#allocation10] sm:$0xff] }
  0xc0   :  { %v240_v0 = vmul.f32 %v864_v53, %v239_v61  ;;  %833 = vmatmul.msk.f32.vlgmr.msra.gmra.mxu1 %vm213_vm1, %v1304_v1  ;;  %v547_v61 = vld [vmem:[#allocation11 + $0x68] sm:$0xff] }
  0xc1   :  { %462 = vmatpush.msrb.mxu1 %v356_v13  ;;  %624 = vmatpush.msrb.mxu3 %v548_v60  ;;  %v535_v13 = vld [vmem:[#allocation11 + $0x8] sm:$0xff]  ;;  %v582_v60 = vld [vmem:[#allocation14 + $0x78] sm:$0xff] }
  0xc2   :  { %v241_v4 = vadd.f32 %v864_v53, %v240_v0  ;;  %v544_v0 = vld [vmem:[#allocation11 + $0x50] sm:$0xff] }
  0xc3   :  { %463 = vmatpush.msrb.mxu1 %v355_v14  ;;  %625 = vmatpush.msrb.mxu3 %v547_v61  ;;  %v534_v14 = vld [vmem:[#allocation11] sm:$0xff]  ;;  %v581_v61 = vld [vmem:[#allocation14 + $0x70] sm:$0xff] }
  0xc4   :  { %v245_v6 = vsel %vm244_vm10, %v864_v53, %v241_v4  ;;  %v328_v53 = vld [vmem:[#allocation7 + $0x20] sm:$0xff]  ;;  %v541_v4 = vld [vmem:[#allocation11 + $0x38] sm:$0xff] }
  0xc5   :  { %v250_v8 = vsel %vm247_vm11, %v249_v5, %v245_v6  ;;  %464 = vmatpush.msrb.mxu1 %v354_v15  ;;  %626 = vmatpush.msrb.mxu3 %v546_v62  ;;  %v540_v5 = vld [vmem:[#allocation11 + $0x30] sm:$0xff]  ;;  %v539_v6 = vld [vmem:[#allocation11 + $0x28] sm:$0xff]  ;;  %v598_v15 = vld [vmem:[#allocation16 + $0x78] sm:$0xff] }
  0xc6   :  { %v1310_v7 = vmul.f32 %v1285_v11, %v250_v8  ;;  %v351_v11 = vld [vmem:[#allocation8 + $0x50] sm:$0xff]  ;;  %v538_v8 = vld [vmem:[#allocation11 + $0x20] sm:$0xff]  ;;  %v580_v62 = vld [vmem:[#allocation14 + $0x68] sm:$0xff] }
  0xc7   :  { %465 = vmatpush.msrb.mxu1 %v353_v16  ;;  %627 = vmatpush.msrb.mxu3 %v545_v63  ;;  %v579_v63 = vld [vmem:[#allocation14 + $0x60] sm:$0xff] }
  0xc8   :  { %834 = vmatmul.msk.f32.gmra.mxu1 %vm213_vm1, %v1310_v7 }
  0xc9   :  { %466 = vmatpush.msrb.mxu1 %v352_v17  ;;  %628 = vmatpush.msrb.mxu3 %v544_v0  ;;  %v597_v17 = vld [vmem:[#allocation16 + $0x70] sm:$0xff]  ;;  %v578_v0 = vld [vmem:[#allocation14 + $0x58] sm:$0xff] }
  0xcb   :  { %467 = vmatpush.msrb.mxu1 %v351_v11  ;;  %629 = vmatpush.msrb.mxu3 %v543_v2  ;;  %v596_v11 = vld [vmem:[#allocation16 + $0x68] sm:$0xff]  ;;  %v577_v2 = vld [vmem:[#allocation14 + $0x50] sm:$0xff] }
  0xcd   :  { %468 = vmatpush.msrb.mxu1 %v350_v18  ;;  %630 = vmatpush.msrb.mxu3 %v542_v3  ;;  %v595_v18 = vld [vmem:[#allocation16 + $0x60] sm:$0xff]  ;;  %v576_v3 = vld [vmem:[#allocation14 + $0x48] sm:$0xff] }
  0xcf   :  { %469 = vmatpush.msrb.mxu1 %v349_v19  ;;  %631 = vmatpush.msrb.mxu3 %v541_v4  ;;  %v594_v19 = vld [vmem:[#allocation16 + $0x58] sm:$0xff]  ;;  %v575_v4 = vld [vmem:[#allocation14 + $0x40] sm:$0xff] }
  0xd1   :  { %470 = vmatpush.msrb.mxu1 %v348_v20  ;;  %632 = vmatpush.msrb.mxu3 %v540_v5  ;;  %v593_v20 = vld [vmem:[#allocation16 + $0x50] sm:$0xff] }
  0xd3   :  { %471 = vmatpush.msrb.mxu1 %v347_v21  ;;  %633 = vmatpush.msrb.mxu3 %v539_v6  ;;  %v592_v21 = vld [vmem:[#allocation16 + $0x48] sm:$0xff]  ;;  %v574_v6 = vld [vmem:[#allocation14 + $0x38] sm:$0xff] }
  0xd5   :  { %472 = vmatpush.msrb.mxu1 %v346_v22  ;;  %634 = vmatpush.msrb.mxu3 %v538_v8  ;;  %v591_v22 = vld [vmem:[#allocation16 + $0x40] sm:$0xff]  ;;  %v573_v8 = vld [vmem:[#allocation14 + $0x30] sm:$0xff] }
  0xd7   :  { %473 = vmatpush.msrb.mxu1 %v345_v23  ;;  %635 = vmatpush.msrb.mxu3 %v537_v9  ;;  %v590_v23 = vld [vmem:[#allocation16 + $0x38] sm:$0xff]  ;;  %v572_v9 = vld [vmem:[#allocation14 + $0x28] sm:$0xff] }
  0xd9   :  { %474 = vmatpush.msrb.mxu1 %v344_v26  ;;  %636 = vmatpush.msrb.mxu3 %v536_v12  ;;  %v587_v26 = vld [vmem:[#allocation16 + $0x20] sm:$0xff] }
  0xdb   :  { %475 = vmatpush.msrb.mxu1 %v343_v27  ;;  %637 = vmatpush.msrb.mxu3 %v535_v13  ;;  %v586_v27 = vld [vmem:[#allocation16 + $0x18] sm:$0xff] }
  0xdc   :  { %v570_v13 = vld [vmem:[#allocation14 + $0x18] sm:$0xff] }
  0xdd   :  { %476 = vmatpush.msrb.mxu1 %v342_v28  ;;  %638 = vmatpush.msrb.mxu3 %v534_v14  ;;  %v585_v28 = vld [vmem:[#allocation16 + $0x10] sm:$0xff] }
  0xde   :  { %v569_v14 = vld [vmem:[#allocation14 + $0x10] sm:$0xff] }
  0xdf   :  { %477 = vmatpush.msrb.mxu1 %v341_v29  ;;  %v584_v29 = vld [vmem:[#allocation16 + $0x8] sm:$0xff] }
 0x138   :  { %v403_v30 = vpop.f32.mrf.mxu2 }
 0x13d   :  { %v380_v24 = vpop.f32.mrf.mxu1 }
 0x13e   :  { %425 = vmatmul.f32.vlgmr.msra.gmra.mxu3 %v380_v24  ;;  %v589_v24 = vld [vmem:[#allocation16 + $0x30] sm:$0xff] }
 0x13f   :  { %750 = vmatpush.msra.mxu3 %v598_v15  ;;  %v568_v15 = vld [vmem:[#allocation14 + $0x8] sm:$0xff] }
 0x140   :  { %v406_v36 = vpop.f32.mrf.mxu2 }
 0x141   :  { %751 = vmatpush.msra.mxu3 %v597_v17 }
 0x143   :  { %752 = vmatpush.msra.mxu3 %v596_v11  ;;  %v858_v11 = vld [vmem:[%s1361_s12] ss:$0 sm:$0xff] }
 0x145   :  { %v383_v25 = vpop.f32.mrf.mxu1  ;;  %753 = vmatpush.msra.mxu3 %v595_v18 }
 0x146   :  { %428 = vmatmul.f32.gmra.mxu3 %v383_v25  ;;  %v588_v25 = vld [vmem:[#allocation16 + $0x28] sm:$0xff] }
 0x147   :  { %754 = vmatpush.msra.mxu3 %v594_v19 }
 0x149   :  { %755 = vmatpush.msra.mxu3 %v593_v20 }
 0x14b   :  { %756 = vmatpush.msra.mxu3 %v592_v21 }
 0x14d   :  { %757 = vmatpush.msra.mxu3 %v591_v22 }
 0x14f   :  { %758 = vmatpush.msra.mxu3 %v590_v23 }
 0x151   :  { %759 = vmatpush.msra.mxu3 %v589_v24 }
 0x153   :  { %760 = vmatpush.msra.mxu3 %v588_v25 }
 0x155   :  { %761 = vmatpush.msra.mxu3 %v587_v26 }
 0x157   :  { %762 = vmatpush.msra.mxu3 %v586_v27  ;;  %v565_v27 = vld [vmem:[#allocation13 + $0x78] sm:$0xff] }
 0x159   :  { %763 = vmatpush.msra.mxu3 %v585_v28  ;;  %v564_v28 = vld [vmem:[#allocation13 + $0x70] sm:$0xff] }
 0x15b   :  { %764 = vmatpush.msra.mxu3 %v584_v29  ;;  %v563_v29 = vld [vmem:[#allocation13 + $0x68] sm:$0xff] }
 0x1c1   :  { %v426_v32 = vpop.f32.mrf.mxu3 }
 0x1c2   :  { %v427_v33 = vadd.f32 %v426_v32, %v403_v30  ;;  %v583_v30 = vld [vmem:[#allocation16] sm:$0xff] }
 0x1c3   :  { %765 = vmatpush.msra.mxu3 %v583_v30  ;;  %v857_v32 = vld [vmem:[%s1358_s9] ss:$0 sm:$0xff] }
 0x1c4   :  { %v435_v34 = vadd.f32 %v856_v31, %v427_v33  ;;  %v562_v30 = vld [vmem:[#allocation13 + $0x60] sm:$0xff] }
 0x1c6   :  { %v437_v35 = vmax.f32 %v435_v34, 0.0 }
 0x1c8   :  { %478 = vmatmul.f32.vlgmr.msrb.gmra.mxu1 %v437_v35 }
 0x1c9   :  { %v429_v37 = vpop.f32.mrf.mxu3 }
 0x1ca   :  { %v430_v38 = vadd.f32 %v429_v37, %v406_v36 }
 0x1cc   :  { %v436_v39 = vadd.f32 %v856_v31, %v430_v38 }
 0x1ce   :  { %v438_v40 = vmax.f32 %v436_v39, 0.0 }
 0x1d0   :  { %453 = vmatpush.msrb.mxu0 %v438_v40  ;;  %481 = vmatmul.f32.gmra.mxu1 %v438_v40 }
 0x1d2   :  { %454 = vmatpush.msrb.mxu0 %v437_v35 }
 0x1d3   :  { %835 = vmatmul.msk.f32.vlgmr.msrb.gmra.mxu0 %vm213_vm1, %v1304_v1 }
 0x1d4   :  { %485 = vmatpush.msra.mxu0 %v339_v41 }
 0x1d6   :  { %486 = vmatpush.msra.mxu0 %v338_v42 }
 0x1d8   :  { %487 = vmatpush.msra.mxu0 %v337_v44 }
 0x1da   :  { %488 = vmatpush.msra.mxu0 %v336_v45  ;;  %v532_v45 = vld [vmem:[#allocation10 + $0x78] sm:$0xff] }
 0x1db   :  { %836 = vmatmul.msk.f32.gmra.mxu0 %vm213_vm1, %v1310_v7 }
 0x1dc   :  { %489 = vmatpush.msra.mxu0 %v335_v46  ;;  %v531_v46 = vld [vmem:[#allocation10 + $0x70] sm:$0xff] }
 0x1de   :  { %490 = vmatpush.msra.mxu0 %v334_v47  ;;  %v530_v47 = vld [vmem:[#allocation10 + $0x68] sm:$0xff] }
 0x1e0   :  { %491 = vmatpush.msra.mxu0 %v333_v48  ;;  %v528_v48 = vld [vmem:[#allocation10 + $0x58] sm:$0xff] }
 0x1e2   :  { %492 = vmatpush.msra.mxu0 %v332_v49  ;;  %v526_v49 = vld [vmem:[#allocation10 + $0x48] sm:$0xff] }
 0x1e4   :  { %493 = vmatpush.msra.mxu0 %v331_v50  ;;  %v525_v50 = vld [vmem:[#allocation10 + $0x40] sm:$0xff] }
 0x1e6   :  { %494 = vmatpush.msra.mxu0 %v330_v51  ;;  %v524_v51 = vld [vmem:[#allocation10 + $0x38] sm:$0xff] }
 0x1e8   :  { %495 = vmatpush.msra.mxu0 %v329_v52  ;;  %v523_v52 = vld [vmem:[#allocation10 + $0x30] sm:$0xff] }
 0x1ea   :  { %496 = vmatpush.msra.mxu0 %v328_v53  ;;  %v522_v53 = vld [vmem:[#allocation10 + $0x28] sm:$0xff] }
 0x1ec   :  { %497 = vmatpush.msra.mxu0 %v327_v54  ;;  %v521_v54 = vld [vmem:[#allocation10 + $0x20] sm:$0xff] }
 0x1ee   :  { %498 = vmatpush.msra.mxu0 %v326_v55  ;;  %v520_v55 = vld [vmem:[#allocation10 + $0x18] sm:$0xff] }
 0x1f0   :  { %499 = vmatpush.msra.mxu0 %v325_v56  ;;  %v519_v56 = vld [vmem:[#allocation10 + $0x10] sm:$0xff] }
 0x1f2   :  { %500 = vmatpush.msra.mxu0 %v324_v57  ;;  %v518_v57 = vld [vmem:[#allocation10 + $0x8] sm:$0xff] }
 0x1f4   :  { %699 = vmatpush.msrb.mxu0 %v582_v60 }
 0x1f6   :  { %700 = vmatpush.msrb.mxu0 %v581_v61 }
 0x1f8   :  { %701 = vmatpush.msrb.mxu0 %v580_v62 }
 0x1fa   :  { %702 = vmatpush.msrb.mxu0 %v579_v63 }
 0x1fc   :  { %703 = vmatpush.msrb.mxu0 %v578_v0 }
 0x1fe   :  { %704 = vmatpush.msrb.mxu0 %v577_v2 }
 0x200   :  { %705 = vmatpush.msrb.mxu0 %v576_v3 }
 0x202   :  { %706 = vmatpush.msrb.mxu0 %v575_v4 }
 0x204   :  { %707 = vmatpush.msrb.mxu0 %v574_v6 }
 0x206   :  { %708 = vmatpush.msrb.mxu0 %v573_v8 }
 0x208   :  { %709 = vmatpush.msrb.mxu0 %v572_v9 }
 0x245   :  { %v479_v31 = vpop.f32.mrf.mxu1 }
 0x24d   :  { %v482_v38 = vpop.f32.mrf.mxu1 }
 0x250   :  { %v456_v10 = vpop.f32.mrf.mxu0 }
 0x251   :  { %501 = vmatmul.f32.vlgmr.msra.gmra.mxu0 %v456_v10  ;;  %v571_v10 = vld [vmem:[#allocation14 + $0x20] sm:$0xff] }
 0x252   :  { %710 = vmatpush.msrb.mxu0 %v571_v10 }
 0x254   :  { %711 = vmatpush.msrb.mxu0 %v570_v13 }
 0x256   :  { %712 = vmatpush.msrb.mxu0 %v569_v14 }
 0x258   :  { %v459_v16 = vpop.f32.mrf.mxu0  ;;  %713 = vmatpush.msrb.mxu0 %v568_v15 }
 0x259   :  { %504 = vmatmul.f32.gmra.mxu0 %v459_v16  ;;  %v567_v16 = vld [vmem:[#allocation14] sm:$0xff] }
 0x25a   :  { %714 = vmatpush.msrb.mxu0 %v567_v16 }
 0x2ce   :  { %v502_v33 = vpop.f32.mrf.mxu0 }
 0x2cf   :  { %v503_v34 = vadd.f32 %v502_v33, %v479_v31  ;;  %v561_v31 = vld [vmem:[#allocation13 + $0x58] sm:$0xff]  ;;  %v559_v33 = vld [vmem:[#allocation13 + $0x48] sm:$0xff] }
 0x2d1   :  { %v511_v35 = vadd.f32 %v857_v32, %v503_v34  ;;  %v558_v34 = vld [vmem:[#allocation13 + $0x40] sm:$0xff] }
 0x2d3   :  { %v513_v36 = vadd.f32 %v511_v35, %v1296_v43  ;;  %v529_v43 = vld [vmem:[#allocation10 + $0x60] sm:$0xff]  ;;  %v557_v35 = vld [vmem:[#allocation13 + $0x38] sm:$0xff] }
 0x2d5   :  { %v515_v37 = vmax.f32 %v513_v36, 0.0  ;;  %v555_v36 = vld [vmem:[#allocation13 + $0x28] sm:$0xff] }
 0x2d6   :  { %v505_v39 = vpop.f32.mrf.mxu0 }
 0x2d7   :  { %v506_v40 = vadd.f32 %v505_v39, %v482_v38  ;;  %639 = vmatmul.f32.vlgmr.msrb.gmra.mxu3 %v515_v37  ;;  %v553_v38 = vld [vmem:[#allocation13 + $0x18] sm:$0xff]  ;;  %v552_v39 = vld [vmem:[#allocation13 + $0x10] sm:$0xff] }
 0x2d9   :  { %v512_v41 = vadd.f32 %v857_v32, %v506_v40  ;;  %v560_v32 = vld [vmem:[#allocation13 + $0x50] sm:$0xff]  ;;  %v551_v40 = vld [vmem:[#allocation13 + $0x8] sm:$0xff] }
 0x2db   :  { %v514_v42 = vadd.f32 %v512_v41, %v1299_v58  ;;  %v527_v58 = vld [vmem:[#allocation10 + $0x50] sm:$0xff] }
 0x2dd   :  { %v516_v44 = vmax.f32 %v514_v42, 0.0 }
 0x2df   :  { %614 = vmatpush.msra.mxu1 %v516_v44  ;;  %642 = vmatmul.f32.gmra.mxu3 %v516_v44 }
 0x2e1   :  { %615 = vmatpush.msra.mxu1 %v515_v37 }
 0x2e2   :  { %837 = vmatmul.msk.f32.vlgmr.msra.gmra.mxu1 %vm213_vm1, %v1304_v1 }
 0x2e3   :  { %646 = vmatpush.msrb.mxu1 %v532_v45  ;;  %v859_v45 = vld [vmem:[%s1364_s15] ss:$0 sm:$0xff] }
 0x2e5   :  { %647 = vmatpush.msrb.mxu1 %v531_v46 }
 0x2e7   :  { %766 = vmatmul.f32.vlgmr.msra.gmra.mxu3 %v515_v37  ;;  %648 = vmatpush.msrb.mxu1 %v530_v47  ;;  %v554_v37 = vld [vmem:[#allocation13 + $0x20] sm:$0xff] }
 0x2e9   :  { %649 = vmatpush.msrb.mxu1 %v529_v43 }
 0x2ea   :  { %838 = vmatmul.msk.f32.gmra.mxu1 %vm213_vm1, %v1310_v7 }
 0x2eb   :  { %650 = vmatpush.msrb.mxu1 %v528_v48 }
 0x2ed   :  { %651 = vmatpush.msrb.mxu1 %v527_v58  ;;  %v860_v58 = vld [vmem:[%s1367_s18] ss:$0 sm:$0xff] }
 0x2ef   :  { %769 = vmatmul.f32.gmra.mxu3 %v516_v44  ;;  %652 = vmatpush.msrb.mxu1 %v526_v49 }
 0x2f1   :  { %653 = vmatpush.msrb.mxu1 %v525_v50 }
 0x2f3   :  { %654 = vmatpush.msrb.mxu1 %v524_v51 }
 0x2f5   :  { %655 = vmatpush.msrb.mxu1 %v523_v52 }
 0x2f7   :  { %656 = vmatpush.msrb.mxu1 %v522_v53 }
 0x2f9   :  { %657 = vmatpush.msrb.mxu1 %v521_v54 }
 0x2fb   :  { %658 = vmatpush.msrb.mxu1 %v520_v55 }
 0x2fd   :  { %659 = vmatpush.msrb.mxu1 %v519_v56 }
 0x2ff   :  { %660 = vmatpush.msrb.mxu1 %v518_v57 }
 0x301   :  { %661 = vmatpush.msrb.mxu1 %v517_v59 }
 0x35a   :  { %v640_v17 = vpop.f32.mrf.mxu3 }
 0x35f   :  { %v617_v5 = vpop.f32.mrf.mxu1 }
 0x360   :  { %662 = vmatmul.f32.vlgmr.msrb.gmra.mxu1 %v617_v5 }
 0x362   :  { %v643_v22 = vpop.f32.mrf.mxu3 }
 0x367   :  { %v620_v12 = vpop.f32.mrf.mxu1 }
 0x368   :  { %665 = vmatmul.f32.gmra.mxu1 %v620_v12 }
 0x36a   :  { %v767_v43 = vpop.f32.mrf.mxu3 }
 0x372   :  { %v770_v56 = vpop.f32.mrf.mxu3 }
 0x3dd   :  { %v663_v18 = vpop.f32.mrf.mxu1 }
 0x3de   :  { %v664_v19 = vadd.f32 %v663_v18, %v640_v17 }
 0x3e0   :  { %v672_v20 = vadd.f32 %v858_v11, %v664_v19 }
 0x3e2   :  { %v674_v21 = vmax.f32 %v672_v20, 0.0 }
 0x3e4   :  { %715 = vmatmul.f32.vlgmr.msrb.gmra.mxu0 %v674_v21 }
 0x3e5   :  { %v666_v23 = vpop.f32.mrf.mxu1 }
 0x3e6   :  { %v667_v24 = vadd.f32 %v666_v23, %v643_v22 }
 0x3e8   :  { %v673_v25 = vadd.f32 %v858_v11, %v667_v24 }
 0x3ea   :  { %v675_v26 = vmax.f32 %v673_v25, 0.0 }
 0x3ec   :  { %690 = vmatpush.msrb.mxu2 %v675_v26  ;;  %718 = vmatmul.f32.gmra.mxu0 %v675_v26 }
 0x3ee   :  { %691 = vmatpush.msrb.mxu2 %v674_v21 }
 0x3ef   :  { %839 = vmatmul.msk.f32.vlgmr.msrb.gmra.mxu2 %vm213_vm1, %v1304_v1  ;;  %v556_v1 = vld [vmem:[#allocation13 + $0x30] sm:$0xff] }
 0x3f0   :  { %722 = vmatpush.msra.mxu2 %v565_v27 }
 0x3f2   :  { %723 = vmatpush.msra.mxu2 %v564_v28 }
 0x3f4   :  { %724 = vmatpush.msra.mxu2 %v563_v29 }
 0x3f6   :  { %725 = vmatpush.msra.mxu2 %v562_v30 }
 0x3f7   :  { %840 = vmatmul.msk.f32.gmra.mxu2 %vm213_vm1, %v1310_v7  ;;  %v550_v7 = vld [vmem:[#allocation13] sm:$0xff] }
 0x3f8   :  { %726 = vmatpush.msra.mxu2 %v561_v31 }
 0x3fa   :  { %727 = vmatpush.msra.mxu2 %v560_v32 }
 0x3fc   :  { %728 = vmatpush.msra.mxu2 %v559_v33 }
 0x3fe   :  { %729 = vmatpush.msra.mxu2 %v558_v34 }
 0x400   :  { %730 = vmatpush.msra.mxu2 %v557_v35 }
 0x402   :  { %731 = vmatpush.msra.mxu2 %v556_v1 }
 0x404   :  { %732 = vmatpush.msra.mxu2 %v555_v36 }
 0x406   :  { %733 = vmatpush.msra.mxu2 %v554_v37 }
 0x408   :  { %734 = vmatpush.msra.mxu2 %v553_v38 }
 0x40a   :  { %735 = vmatpush.msra.mxu2 %v552_v39 }
 0x40c   :  { %736 = vmatpush.msra.mxu2 %v551_v40 }
 0x40e   :  { %737 = vmatpush.msra.mxu2 %v550_v7 }
 0x461   :  { %v716_v44 = vpop.f32.mrf.mxu0 }
 0x469   :  { %v719_v51 = vpop.f32.mrf.mxu0 }
 0x472   :  { %v693_v41 = vpop.f32.mrf.mxu2 }
 0x473   :  { %738 = vmatmul.f32.vlgmr.msra.gmra.mxu2 %v693_v41 }
 0x47a   :  { %v696_v42 = vpop.f32.mrf.mxu2 }
 0x47b   :  { %741 = vmatmul.f32.gmra.mxu2 %v696_v42 }
 0x4f6   :  { %v739_v46 = vpop.f32.mrf.mxu2 }
 0x4f7   :  { %v740_v47 = vadd.f32 %v739_v46, %v716_v44 }
 0x4f9   :  { %v748_v48 = vadd.f32 %v859_v45, %v740_v47 }
 0x4fb   :  { %v773_v49 = vadd.f32 %v767_v43, %v748_v48 }
 0x4fd   :  { %v778_v50 = vadd.f32 %v860_v58, %v773_v49 }
 0x4fe   :  { %v742_v52 = vpop.f32.mrf.mxu2 }
 0x4ff   :  { %v841_v53 = vmul.f32 -1.442695, %v778_v50  ;;  %v743_v54 = vadd.f32 %v742_v52, %v719_v51 }
 0x501   :  { %865 = vpow2.f32 %v841_v53  ;;  %v749_v55 = vadd.f32 %v859_v45, %v743_v54 }
 0x503   :  { %v774_v57 = vadd.f32 %v770_v56, %v749_v55 }
 0x505   :  { %v779_v59 = vadd.f32 %v860_v58, %v774_v57 }
 0x507   :  { %v866_v60 = vpop.eup %865  ;;  %v842_v61 = vmul.f32 -1.442695, %v779_v59 }
 0x508   :  { %v786_v62 = vadd.f32 1.0, %v866_v60 }
 0x509   :  { %867 = vpow2.f32 %v842_v61 }
 0x50a   :  { %869 = vrcp.f32 %v786_v62  ;;  %v799_v5 = vand.u32 2147483648, %v786_v62  ;;  %v797_v8 = vand.u32 2147483647, %v786_v62  ;;  %vm793_vm13 = vweird.f32 %v786_v62 }
 0x50c   :  { %v800_v12 = vor.u32 1.1754944e-38, %v799_v5  ;;  %vm798_vm15 = vcmp.eq.f32.partialorder %v797_v8, 8.507059e+37 }
 0x50f   :  { %v868_v63 = vpop.eup %867 }
 0x510   :  { %v870_v0 = vpop.eup %869  ;;  %v787_v2 = vadd.f32 1.0, %v868_v63 }
 0x511   :  { %v789_v3 = vmul.f32 %v870_v0, %v786_v62  ;;  %vm794_vm12 = vweird.f32 %v870_v0 }
 0x512   :  { %871 = vrcp.f32 %v787_v2  ;;  %vm795_vm14 = vmor %vm793_vm13, %vm794_vm12  ;;  %v814_v17 = vand.u32 2147483648, %v787_v2  ;;  %v812_v18 = vand.u32 2147483647, %v787_v2  ;;  %vm808_vm1 = vweird.f32 %v787_v2 }
 0x513   :  { %v790_v4 = vsub.f32 1.0, %v789_v3 }
 0x514   :  { %v815_v20 = vor.u32 1.1754944e-38, %v814_v17  ;;  %vm813_vm3 = vcmp.eq.f32.partialorder %v812_v18, 8.507059e+37 }
 0x515   :  { %v791_v6 = vmul.f32 %v870_v0, %v790_v4 }
 0x517   :  { %v792_v9 = vadd.f32 %v870_v0, %v791_v6 }
 0x518   :  { %v872_v10 = vpop.eup %871 }
 0x519   :  { %v796_v13 = vsel %vm795_vm14, %v870_v0, %v792_v9  ;;  %v804_v14 = vmul.f32 %v872_v10, %v787_v2  ;;  %vm809_vm0 = vweird.f32 %v872_v10 }
 0x51a   :  { %v801_v15 = vsel %vm798_vm15, %v800_v12, %v796_v13  ;;  %vm810_vm2 = vmor %vm808_vm1, %vm809_vm0 }
 0x51b   :  { %818 = vst [vmem:[%s1368_s19] sm:$0xff] %v801_v15  ;;  %v805_v16 = vsub.f32 1.0, %v804_v14 }
 0x51d   :  { %v806_v11 = vmul.f32 %v872_v10, %v805_v16 }
 0x51f   :  { %v807_v19 = vadd.f32 %v872_v10, %v806_v11 }
 0x521   :  { %v811_v21 = vsel %vm810_vm2, %v872_v10, %v807_v19 }
 0x522   :  { %v816_v22 = vsel %vm813_vm3, %v815_v20, %v811_v21 }
 0x523   :  { %819 = vst [vmem:[%s1368_s19 + $0x8] sm:$0xff] %v816_v22 }
 0x524   :  { %824 = vsyncpa [#allocation4], 1 }
 0x525   :  { %825 = vsyncpa [#allocation6], 1 }
 0x526   :  { %826 = vsyncpa [#allocation9], 1 }
 0x527   :  { %827 = vsyncpa [#allocation12], 1 }
 0x528   :  { %828 = vsyncpa [#allocation15], 1 }

</bundles_post_ra>
